<compile_context>
chip_gen: v5e
topology: v5e:2x2
jax: 0.10.0
libtpu: 0.0.40
codegen_flags: <defaults>
</compile_context>

<pallas_src>
import math

import jax
import jax.numpy as jnp
from jax.experimental import pallas as pl
from jax.experimental.pallas import tpu as pltpu


# ---------------------------------------------------------------------------
# PE table (the torch register_buffer), built once on the host in plain JAX.
# ---------------------------------------------------------------------------
def make_positional_encoding(max_seq_length, d_model, dtype=jnp.float32):
    position = jnp.arange(max_seq_length, dtype=jnp.float32)[:, None]          # [L, 1]
    div_term = jnp.exp(
        jnp.arange(0, d_model, 2, dtype=jnp.float32) * (-math.log(10000.0) / d_model)
    )                                                                            # [D/2]
    ang = position * div_term                                                    # [L, D/2]
    pe = jnp.zeros((max_seq_length, d_model), dtype=jnp.float32)
    pe = pe.at[:, 0::2].set(jnp.sin(ang))
    pe = pe.at[:, 1::2].set(jnp.cos(ang))
    return pe.astype(dtype)


# ---------------------------------------------------------------------------
# Kernels (purely memory-bound elementwise; all math stays in x.dtype)
# ---------------------------------------------------------------------------
def pe_add_kernel(x_ref, pe_ref, o_ref):
    # x tile: [tb, ts, D], pe tile: [ts, D] -> broadcast over batch.
    o_ref[...] = (x_ref[...] + pe_ref[...]).astype(o_ref.dtype)


def pe_add_dropout_kernel(x_ref, pe_ref, m_ref, o_ref):
    # m tile holds {0, 1/(1-p)} already in x.dtype -> inverted dropout is one multiply.
    o_ref[...] = ((x_ref[...] + pe_ref[...]) * m_ref[...]).astype(o_ref.dtype)


# ---------------------------------------------------------------------------
# Tile selection: biggest sequence tile that fits the per-step VMEM budget.
# ---------------------------------------------------------------------------
def _choose_tiles(B, S, D, x_bytes, mask_bytes, budget_bytes, max_seq_tile):
    # 32-row granularity keeps the second-minor block dim legal for f32/bf16/int8.
    gran = 32

    def per_step_bytes(tb, ts):
        x_like = 2 * x_bytes + mask_bytes               # x in + out (+ mask) per element
        return 2 * (tb * ts * D * x_like + ts * D * x_bytes)   # x2: double buffering; + pe rows

    # Shrink the batch tile only if even a minimal seq tile would blow the budget.
    tb = B
    while tb > 1 and per_step_bytes(tb, min(S, gran)) > budget_bytes:
        tb = max(1, tb // 2)

    if S <= gran:
        ts = S                                           # full axis: always a legal block
    else:
        max_ts = min(max_seq_tile, (S // gran) * gran)
        rows = budget_bytes // max(1, per_step_bytes(tb, 1))
        ts = min(max_ts, max(gran, (rows // gran) * gran))
    return tb, ts


# ---------------------------------------------------------------------------
# Wrapper
# ---------------------------------------------------------------------------
def positional_encoding_forward(
    x,
    pe,
    dropout_p=0.1,
    training=False,
    rng_key=None,
    budget_bytes=16 << 20,     # per-grid-step VMEM budget (safe for v7x's 64 MiB VMEM)
    max_seq_tile=1024,         # HBM roofline flattens past ~1024 rows at D=128
    donate_x=False,            # set True (with jit donation) to alias x's HBM buffer
):
    """Pallas implementation of PositionalEncoding.forward.

    x:  [B, S, D]   input sequence
    pe: [L, D]      precomputed sinusoidal table (L = max_seq_length)
    """
    B, S, D = x.shape
    L = pe.shape[0]
    if S > L:                      # torch: x = x[:, :self.pe.size(1), :]
        x = x[:, :L, :]
        S = L
    if pe.dtype != x.dtype:        # keep bf16 end-to-end; halves PE DMA bytes for bf16
        pe = pe.astype(x.dtype)

    apply_dropout = bool(training) and dropout_p > 0.0
    if apply_dropout and dropout_p >= 1.0:
        # torch.nn.Dropout(p=1.0) outputs zeros (1/(1-p) would be inf).
        return jnp.zeros_like(x)

    x_bytes = jnp.dtype(x.dtype).itemsize
    mask_bytes = x_bytes if apply_dropout else 0
    tb, ts = _choose_tiles(B, S, D, x_bytes, mask_bytes, budget_bytes, max_seq_tile)

    grid = (pl.cdiv(B, tb), pl.cdiv(S, ts))
    out_shape = jax.ShapeDtypeStruct((B, S, D), x.dtype)
    cparams = pltpu.CompilerParams(
        dimension_semantics=("parallel", "parallel"),
        vmem_limit_bytes=48 << 20,     # above the 16/32 MiB scoped defaults, below v7x physical
    )
    x_spec = pl.BlockSpec((tb, ts, D), lambda b, i: (b, i, 0))
    pe_spec = pl.BlockSpec((ts, D), lambda b, i: (i, 0))       # PE ignores the batch index
    out_spec = pl.BlockSpec((tb, ts, D), lambda b, i: (b, i, 0))
    aliases = {0: 0} if donate_x else {}

    if not apply_dropout:
        # eval mode: dropout is identity -> pure tiled add.
        return pl.pallas_call(
            pe_add_kernel,
            out_shape=out_shape,
            grid=grid,
            in_specs=[x_spec, pe_spec],
            out_specs=out_spec,
            compiler_params=cparams,
            input_output_aliases=aliases,
        )(x, pe)

    # training mode: fused add + inverted dropout.  Mask built on the host from
    # jax.random (same distribution/scaling as torch, different random stream).
    if rng_key is None:
        rng_key = jax.random.PRNGKey(0)
    p = float(dropout_p)
    scale = 1.0 / (1.0 - p)
    keep = jax.random.bernoulli(rng_key, 1.0 - p, (B, S, D))
    mask = (keep.astype(jnp.float32) * scale).astype(x.dtype)

    return pl.pallas_call(
        pe_add_dropout_kernel,
        out_shape=out_shape,
        grid=grid,
        in_specs=[x_spec, pe_spec, x_spec],     # mask is tiled exactly like x
        out_specs=out_spec,
        compiler_params=cparams,
        input_output_aliases=aliases,
    )(x, pe, mask)


# ---------------------------------------------------------------------------
# Demo / correctness check
# ---------------------------------------------------------------------------
if __name__ == "__main__":
    key = jax.random.PRNGKey(0)
    kx, kd = jax.random.split(key)

    B, S, D = 2, 256, 128          # lane-dense last dim (multiple of 128)
    max_seq_length = 512
    dropout_p = 0.1

    x = jax.random.normal(kx, (B, S, D), dtype=jnp.float32)
    pe = make_positional_encoding(max_seq_length, D, dtype=x.dtype)

    ref = x + pe[None, :S, :]

    # eval mode: dropout is identity -> exact match against the plain-JAX reference.
    out = positional_encoding_forward(x, pe, dropout_p=dropout_p, training=False)
    out = jax.block_until_ready(out)
    assert out.shape == (B, S, D)
    assert jnp.allclose(out, ref, atol=1e-6, rtol=1e-6)

    # training mode: every output element is either 0 (dropped) or (x+pe)/(1-p) (kept).
    out_tr = positional_encoding_forward(
        x, pe, dropout_p=dropout_p, training=True, rng_key=kd
    )
    out_tr = jax.block_until_ready(out_tr)
    assert out_tr.shape == (B, S, D)
    scale = 1.0 / (1.0 - dropout_p)
    kept_ok = jnp.isclose(out_tr, ref * scale, rtol=1e-5, atol=1e-5)
    dropped = out_tr == 0.0
    assert bool(jnp.all(kept_ok | dropped))
    drop_frac = float(jnp.mean(dropped.astype(jnp.float32)))
    assert abs(drop_frac - dropout_p) < 0.03

    print("KERNEL_OK")
</pallas_src>

<mosaic_0001>
module attributes {stable_mosaic.version = 11 : i64} {
  func.func @pe_add_kernel(%arg0: i32, %arg1: i32, %arg2: memref<2x256x128xf32, #tpu.memory_space<vmem>>, %arg3: memref<256x128xf32, #tpu.memory_space<vmem>>, %arg4: memref<2x256x128xf32, #tpu.memory_space<vmem>>) attributes {dimension_semantics = [#tpu.dimension_semantics<parallel>, #tpu.dimension_semantics<parallel>], iteration_bounds = array<i64: 1, 1>, scalar_prefetch = 0 : i64, scratch_operands = 0 : i64, tpu.core_type = #tpu.core_type<tc>, window_params = [{transform_indices = @transform_0, window_bounds = array<i64: 2, 256, 128>}, {transform_indices = @transform_1, window_bounds = array<i64: 256, 128>}, {transform_indices = @transform_2, window_bounds = array<i64: 2, 256, 128>}]} {
    %c0 = arith.constant 0 : index
    %c0_0 = arith.constant 0 : index
    %c0_1 = arith.constant 0 : index
    %0 = vector.load %arg2[%c0, %c0_0, %c0_1] : memref<2x256x128xf32, #tpu.memory_space<vmem>>, vector<2x256x128xf32>
    %c0_2 = arith.constant 0 : index
    %c0_3 = arith.constant 0 : index
    %1 = vector.load %arg3[%c0_2, %c0_3] : memref<256x128xf32, #tpu.memory_space<vmem>>, vector<256x128xf32>
    %2 = vector.shape_cast %1 : vector<256x128xf32> to vector<1x256x128xf32>
    %3 = vector.broadcast %2 : vector<1x256x128xf32> to vector<2x256x128xf32>
    %4 = arith.addf %0, %3 : vector<2x256x128xf32>
    %c0_4 = arith.constant 0 : index
    %c0_5 = arith.constant 0 : index
    %c0_6 = arith.constant 0 : index
    %5 = vector.load %arg4[%c0_4, %c0_5, %c0_6] : memref<2x256x128xf32, #tpu.memory_space<vmem>>, vector<2x256x128xf32>
    tpu.vector_store %arg4[%c0_4, %c0_5, %c0_6], %4 {strides = array<i32>} : memref<2x256x128xf32, #tpu.memory_space<vmem>>, vector<2x256x128xf32>,
    return
  }
  func.func @transform_0(%arg0: i32, %arg1: i32) -> (i32, i32, i32) {
    %c0_i32 = arith.constant 0 : i32
    %c0_i32_0 = arith.constant 0 : i32
    return %arg0, %arg1, %c0_i32 : i32, i32, i32
  }
  func.func @transform_1(%arg0: i32, %arg1: i32) -> (i32, i32) {
    %c0_i32 = arith.constant 0 : i32
    %c0_i32_0 = arith.constant 0 : i32
    return %arg1, %c0_i32 : i32, i32
  }
  func.func @transform_2(%arg0: i32, %arg1: i32) -> (i32, i32, i32) {
    %c0_i32 = arith.constant 0 : i32
    %c0_i32_0 = arith.constant 0 : i32
    return %arg0, %arg1, %c0_i32 : i32, i32, i32
  }
}

</mosaic_0001>

<bundles_post_ra>
// kernel: tpu_custom_call.1
= control target key start
LH: loop header
LB: loop body
LE: loop exit
PB: predicated region body
PF: predicated region fallthrough
CT: control target
= control target key end

     0   :  { %7 = vsyncpa [#allocation3], 0  ;;  %s537_s0 = inlined_call_operand.hbm [shape: f32[2,256,128], index: 0, kind: input, shape index: {}]   ;;  %s538_s1 = inlined_call_operand.hbm [shape: f32[512,128], index: 1, kind: input, shape index: {}]   ;;  %s539_s2 = inlined_call_operand.hbm [shape: f32[2,256,128], index: 2, kind: output, shape index: {}]  }
   0x1   :  { %8 = vsyncpa [#allocation6], 0 }
   0x2   :  { %9 = vsyncpa [#allocation4], 0  ;;  %s14_s11 = sshll.u32 %s537_s0, 4  ;;  %s371_s12 = smov [#allocation2]   ;;  %s15_s11 = int_to_ptr.hbm [resolvable:$true] %s14_s11 }
   0x3   :  { %s16_s13 = sshll.u32 %s371_s12, 4  ;;  %s27_s16 = sshll.u32 %s538_s1, 4  ;;  %s17_s13 = int_to_ptr.vmem [resolvable:$true] %s16_s13  ;;  %s28_s16 = int_to_ptr.hbm [resolvable:$true] %s27_s16 }
   0x4   :  { %s372_s17 = smov 128   ;;  %s373_s18 = smov 8  }
   0x5   :  { %22 = dma.hbm_to_vmem [thread:$0]  %s15_s11, 8192, %s17_s13, [#allocation3], %s372_s17, %s372_s17, %s373_s18  }
   0x6   :  { %s374_s19 = smov [#allocation5]  }
   0x7   :  { %s29_s20 = sshll.u32 %s374_s19, 4  ;;  %s30_s20 = int_to_ptr.vmem [resolvable:$true] %s29_s20 }
   0x8   :  { %35 = dma.hbm_to_vmem [thread:$0]  %s28_s16, 4096, %s30_s20, [#allocation6], %s372_s17, %s372_s17, %s373_s18  }
   0x9   :  { %365 = dma.done.wait [#allocation3], 8192  }
   0xa   :  { %366 = vsyncadd [#allocation3], 4294959104 }
   0xb   :  { %367 = dma.done.wait [#allocation6], 4096  }
   0xc   :  { %368 = vsyncadd [#allocation6], 4294963200  ;;  %v44_v0 = vld [vmem:[#allocation2] sm:$0xff]  ;;  %v45_v2 = vld [vmem:[#allocation2 + $0x8] sm:$0xff]  ;;  %s375_s0 = smov [#allocation7]   ;;  %s274_s23 = sshll.u32 %s539_s2, 4  ;;  %s275_s23 = int_to_ptr.hbm [resolvable:$true] %s274_s23 }
   0xd   :  { %v403_v1 = vld [vmem:[#allocation5] sm:$0xff]  ;;  %v406_v4 = vld [vmem:[#allocation5 + $0x8] sm:$0xff]  ;;  %v46_v5 = vld [vmem:[#allocation2 + $0x10] sm:$0xff]  ;;  %s272_s1 = sshll.u32 %s375_s0, 4  ;;  %s273_s1 = int_to_ptr.vmem [resolvable:$true] %s272_s1 }
   0xe   :  { %v140_v3 = vadd.f32 %v403_v1, %v44_v0  ;;  %v408_v6 = vld [vmem:[#allocation5 + $0x10] sm:$0xff]  ;;  %v141_v7 = vadd.f32 %v406_v4, %v45_v2  ;;  %v47_v9 = vld [vmem:[#allocation2 + $0x18] sm:$0xff]  ;;  %v48_v11 = vld [vmem:[#allocation2 + $0x20] sm:$0xff] }
   0xf   :  { %v142_v8 = vadd.f32 %v408_v6, %v46_v5  ;;  %v412_v10 = vld [vmem:[#allocation5 + $0x18] sm:$0xff]  ;;  %v415_v13 = vld [vmem:[#allocation5 + $0x20] sm:$0xff]  ;;  %v49_v14 = vld [vmem:[#allocation2 + $0x28] sm:$0xff] }
  0x10   :  { %204 = vst [vmem:[#allocation7] sm:$0xff] %v140_v3  ;;  %v143_v12 = vadd.f32 %v412_v10, %v47_v9  ;;  %v417_v15 = vld [vmem:[#allocation5 + $0x28] sm:$0xff]  ;;  %v144_v16 = vadd.f32 %v415_v13, %v48_v11  ;;  %v50_v18 = vld [vmem:[#allocation2 + $0x30] sm:$0xff]  ;;  %v51_v20 = vld [vmem:[#allocation2 + $0x38] sm:$0xff] }
  0x11   :  { %205 = vst [vmem:[#allocation7 + $0x8] sm:$0xff] %v141_v7  ;;  %v145_v17 = vadd.f32 %v417_v15, %v49_v14  ;;  %v421_v19 = vld [vmem:[#allocation5 + $0x30] sm:$0xff]  ;;  %v424_v22 = vld [vmem:[#allocation5 + $0x38] sm:$0xff]  ;;  %v52_v23 = vld [vmem:[#allocation2 + $0x40] sm:$0xff] }
  0x12   :  { %206 = vst [vmem:[#allocation7 + $0x10] sm:$0xff] %v142_v8  ;;  %v146_v21 = vadd.f32 %v421_v19, %v50_v18  ;;  %v426_v24 = vld [vmem:[#allocation5 + $0x40] sm:$0xff]  ;;  %v147_v25 = vadd.f32 %v424_v22, %v51_v20  ;;  %v53_v26 = vld [vmem:[#allocation2 + $0x48] sm:$0xff]  ;;  %v54_v28 = vld [vmem:[#allocation2 + $0x50] sm:$0xff] }
  0x13   :  { %207 = vst [vmem:[#allocation7 + $0x18] sm:$0xff] %v143_v12  ;;  %v429_v27 = vld [vmem:[#allocation5 + $0x48] sm:$0xff]  ;;  %v148_v29 = vadd.f32 %v426_v24, %v52_v23  ;;  %v432_v30 = vld [vmem:[#allocation5 + $0x50] sm:$0xff]  ;;  %v55_v31 = vld [vmem:[#allocation2 + $0x58] sm:$0xff] }
  0x14   :  { %208 = vst [vmem:[#allocation7 + $0x20] sm:$0xff] %v144_v16  ;;  %v434_v32 = vld [vmem:[#allocation5 + $0x58] sm:$0xff]  ;;  %v149_v33 = vadd.f32 %v429_v27, %v53_v26  ;;  %v56_v34 = vld [vmem:[#allocation2 + $0x60] sm:$0xff]  ;;  %v150_v36 = vadd.f32 %v432_v30, %v54_v28  ;;  %v57_v37 = vld [vmem:[#allocation2 + $0x68] sm:$0xff] }
  0x15   :  { %209 = vst [vmem:[#allocation7 + $0x28] sm:$0xff] %v145_v17  ;;  %v437_v35 = vld [vmem:[#allocation5 + $0x60] sm:$0xff]  ;;  %v440_v38 = vld [vmem:[#allocation5 + $0x68] sm:$0xff]  ;;  %v151_v39 = vadd.f32 %v434_v32, %v55_v31  ;;  %v58_v40 = vld [vmem:[#allocation2 + $0x70] sm:$0xff] }
  0x16   :  { %210 = vst [vmem:[#allocation7 + $0x30] sm:$0xff] %v146_v21  ;;  %v443_v41 = vld [vmem:[#allocation5 + $0x70] sm:$0xff]  ;;  %v152_v42 = vadd.f32 %v437_v35, %v56_v34  ;;  %v59_v43 = vld [vmem:[#allocation2 + $0x78] sm:$0xff]  ;;  %v153_v45 = vadd.f32 %v440_v38, %v57_v37  ;;  %v60_v46 = vld [vmem:[#allocation2 + $0x80] sm:$0xff] }
  0x17   :  { %211 = vst [vmem:[#allocation7 + $0x38] sm:$0xff] %v147_v25  ;;  %v446_v44 = vld [vmem:[#allocation5 + $0x78] sm:$0xff]  ;;  %v449_v47 = vld [vmem:[#allocation5 + $0x80] sm:$0xff]  ;;  %v154_v48 = vadd.f32 %v443_v41, %v58_v40  ;;  %v61_v49 = vld [vmem:[#allocation2 + $0x88] sm:$0xff] }
  0x18   :  { %212 = vst [vmem:[#allocation7 + $0x40] sm:$0xff] %v148_v29  ;;  %v452_v50 = vld [vmem:[#allocation5 + $0x88] sm:$0xff]  ;;  %v155_v51 = vadd.f32 %v446_v44, %v59_v43  ;;  %v62_v52 = vld [vmem:[#allocation2 + $0x90] sm:$0xff]  ;;  %v156_v54 = vadd.f32 %v449_v47, %v60_v46  ;;  %v63_v55 = vld [vmem:[#allocation2 + $0x98] sm:$0xff] }
  0x19   :  { %213 = vst [vmem:[#allocation7 + $0x48] sm:$0xff] %v149_v33  ;;  %v455_v53 = vld [vmem:[#allocation5 + $0x90] sm:$0xff]  ;;  %v458_v56 = vld [vmem:[#allocation5 + $0x98] sm:$0xff]  ;;  %v157_v57 = vadd.f32 %v452_v50, %v61_v49  ;;  %v64_v58 = vld [vmem:[#allocation2 + $0xa0] sm:$0xff] }
  0x1a   :  { %214 = vst [vmem:[#allocation7 + $0x50] sm:$0xff] %v150_v36  ;;  %v461_v59 = vld [vmem:[#allocation5 + $0xa0] sm:$0xff]  ;;  %v158_v60 = vadd.f32 %v455_v53, %v62_v52  ;;  %v65_v61 = vld [vmem:[#allocation2 + $0xa8] sm:$0xff]  ;;  %v159_v63 = vadd.f32 %v458_v56, %v63_v55  ;;  %v66_v0 = vld [vmem:[#allocation2 + $0xb0] sm:$0xff] }
  0x1b   :  { %215 = vst [vmem:[#allocation7 + $0x58] sm:$0xff] %v151_v39  ;;  %v464_v62 = vld [vmem:[#allocation5 + $0xa8] sm:$0xff]  ;;  %v467_v2 = vld [vmem:[#allocation5 + $0xb0] sm:$0xff]  ;;  %v160_v3 = vadd.f32 %v461_v59, %v64_v58  ;;  %v67_v5 = vld [vmem:[#allocation2 + $0xb8] sm:$0xff] }
  0x1c   :  { %216 = vst [vmem:[#allocation7 + $0x60] sm:$0xff] %v152_v42  ;;  %v470_v7 = vld [vmem:[#allocation5 + $0xb8] sm:$0xff]  ;;  %v161_v8 = vadd.f32 %v464_v62, %v65_v61  ;;  %v68_v9 = vld [vmem:[#allocation2 + $0xc0] sm:$0xff]  ;;  %v162_v12 = vadd.f32 %v467_v2, %v66_v0  ;;  %v69_v14 = vld [vmem:[#allocation2 + $0xc8] sm:$0xff] }
  0x1d   :  { %217 = vst [vmem:[#allocation7 + $0x68] sm:$0xff] %v153_v45  ;;  %v473_v11 = vld [vmem:[#allocation5 + $0xc0] sm:$0xff]  ;;  %v476_v16 = vld [vmem:[#allocation5 + $0xc8] sm:$0xff]  ;;  %v163_v17 = vadd.f32 %v470_v7, %v67_v5  ;;  %v70_v18 = vld [vmem:[#allocation2 + $0xd0] sm:$0xff] }
  0x1e   :  { %218 = vst [vmem:[#allocation7 + $0x70] sm:$0xff] %v154_v48  ;;  %v479_v20 = vld [vmem:[#allocation5 + $0xd0] sm:$0xff]  ;;  %v164_v21 = vadd.f32 %v473_v11, %v68_v9  ;;  %v71_v23 = vld [vmem:[#allocation2 + $0xd8] sm:$0xff]  ;;  %v165_v26 = vadd.f32 %v476_v16, %v69_v14  ;;  %v72_v28 = vld [vmem:[#allocation2 + $0xe0] sm:$0xff] }
  0x1f   :  { %219 = vst [vmem:[#allocation7 + $0x78] sm:$0xff] %v155_v51  ;;  %v482_v25 = vld [vmem:[#allocation5 + $0xd8] sm:$0xff]  ;;  %v485_v29 = vld [vmem:[#allocation5 + $0xe0] sm:$0xff]  ;;  %v166_v31 = vadd.f32 %v479_v20, %v70_v18  ;;  %v73_v33 = vld [vmem:[#allocation2 + $0xe8] sm:$0xff] }
  0x20   :  { %220 = vst [vmem:[#allocation7 + $0x80] sm:$0xff] %v156_v54  ;;  %v488_v34 = vld [vmem:[#allocation5 + $0xe8] sm:$0xff]  ;;  %v167_v36 = vadd.f32 %v482_v25, %v71_v23  ;;  %v74_v37 = vld [vmem:[#allocation2 + $0xf0] sm:$0xff]  ;;  %v168_v40 = vadd.f32 %v485_v29, %v72_v28  ;;  %v75_v42 = vld [vmem:[#allocation2 + $0xf8] sm:$0xff] }
  0x21   :  { %221 = vst [vmem:[#allocation7 + $0x88] sm:$0xff] %v157_v57  ;;  %v491_v39 = vld [vmem:[#allocation5 + $0xf0] sm:$0xff]  ;;  %v494_v43 = vld [vmem:[#allocation5 + $0xf8] sm:$0xff]  ;;  %v169_v45 = vadd.f32 %v488_v34, %v73_v33  ;;  %v76_v46 = vld [vmem:[#allocation2 + $0x100] sm:$0xff] }
  0x22   :  { %222 = vst [vmem:[#allocation7 + $0x90] sm:$0xff] %v158_v60  ;;  %v170_v48 = vadd.f32 %v491_v39, %v74_v37  ;;  %v77_v49 = vld [vmem:[#allocation2 + $0x108] sm:$0xff]  ;;  %v171_v51 = vadd.f32 %v494_v43, %v75_v42  ;;  %v78_v52 = vld [vmem:[#allocation2 + $0x110] sm:$0xff]  ;;  %v172_v54 = vadd.f32 %v403_v1, %v76_v46  ;;  %v79_v55 = vld [vmem:[#allocation2 + $0x118] sm:$0xff] }
  0x23   :  { %223 = vst [vmem:[#allocation7 + $0x98] sm:$0xff] %v159_v63  ;;  %v173_v57 = vadd.f32 %v406_v4, %v77_v49  ;;  %v80_v58 = vld [vmem:[#allocation2 + $0x120] sm:$0xff]  ;;  %v174_v60 = vadd.f32 %v408_v6, %v78_v52  ;;  %v81_v61 = vld [vmem:[#allocation2 + $0x128] sm:$0xff]  ;;  %v175_v63 = vadd.f32 %v412_v10, %v79_v55  ;;  %v82_v0 = vld [vmem:[#allocation2 + $0x130] sm:$0xff] }
  0x24   :  { %224 = vst [vmem:[#allocation7 + $0xa0] sm:$0xff] %v160_v3  ;;  %v176_v3 = vadd.f32 %v415_v13, %v80_v58  ;;  %v83_v5 = vld [vmem:[#allocation2 + $0x138] sm:$0xff]  ;;  %v177_v1 = vadd.f32 %v417_v15, %v81_v61  ;;  %v178_v4 = vadd.f32 %v421_v19, %v82_v0  ;;  %v85_v9 = vld [vmem:[#allocation2 + $0x148] sm:$0xff] }
  0x25   :  { %225 = vst [vmem:[#allocation7 + $0xa8] sm:$0xff] %v161_v8  ;;  %v84_v8 = vld [vmem:[#allocation2 + $0x140] sm:$0xff]  ;;  %v179_v6 = vadd.f32 %v424_v22, %v83_v5  ;;  %v87_v14 = vld [vmem:[#allocation2 + $0x158] sm:$0xff]  ;;  %v181_v13 = vadd.f32 %v429_v27, %v85_v9  ;;  %v89_v18 = vld [vmem:[#allocation2 + $0x168] sm:$0xff] }
  0x26   :  { %226 = vst [vmem:[#allocation7 + $0xb0] sm:$0xff] %v162_v12  ;;  %v86_v12 = vld [vmem:[#allocation2 + $0x150] sm:$0xff]  ;;  %v180_v10 = vadd.f32 %v426_v24, %v84_v8  ;;  %v183_v19 = vadd.f32 %v434_v32, %v87_v14  ;;  %v91_v23 = vld [vmem:[#allocation2 + $0x178] sm:$0xff]  ;;  %v185_v24 = vadd.f32 %v440_v38, %v89_v18  ;;  %v93_v28 = vld [vmem:[#allocation2 + $0x188] sm:$0xff] }
  0x27   :  { %227 = vst [vmem:[#allocation7 + $0xb8] sm:$0xff] %v163_v17  ;;  %v88_v17 = vld [vmem:[#allocation2 + $0x160] sm:$0xff]  ;;  %v182_v15 = vadd.f32 %v432_v30, %v86_v12  ;;  %v187_v30 = vadd.f32 %v446_v44, %v91_v23  ;;  %v95_v33 = vld [vmem:[#allocation2 + $0x198] sm:$0xff]  ;;  %v97_v37 = vld [vmem:[#allocation2 + $0x1a8] sm:$0xff] }
  0x28   :  { %228 = vst [vmem:[#allocation7 + $0xc0] sm:$0xff] %v164_v21  ;;  %v90_v21 = vld [vmem:[#allocation2 + $0x170] sm:$0xff]  ;;  %v184_v22 = vadd.f32 %v437_v35, %v88_v17  ;;  %v189_v35 = vadd.f32 %v452_v50, %v93_v28  ;;  %v99_v42 = vld [vmem:[#allocation2 + $0x1b8] sm:$0xff]  ;;  %v101_v46 = vld [vmem:[#allocation2 + $0x1c8] sm:$0xff] }
  0x29   :  { %229 = vst [vmem:[#allocation7 + $0xc8] sm:$0xff] %v165_v26  ;;  %v92_v26 = vld [vmem:[#allocation2 + $0x180] sm:$0xff]  ;;  %v186_v27 = vadd.f32 %v443_v41, %v90_v21  ;;  %v191_v41 = vadd.f32 %v458_v56, %v95_v33  ;;  %v103_v49 = vld [vmem:[#allocation2 + $0x1d8] sm:$0xff]  ;;  %v105_v52 = vld [vmem:[#allocation2 + $0x1e8] sm:$0xff] }
  0x2a   :  { %230 = vst [vmem:[#allocation7 + $0xd0] sm:$0xff] %v166_v31  ;;  %v94_v31 = vld [vmem:[#allocation2 + $0x190] sm:$0xff]  ;;  %v188_v32 = vadd.f32 %v449_v47, %v92_v26  ;;  %v193_v47 = vadd.f32 %v464_v62, %v97_v37  ;;  %v107_v55 = vld [vmem:[#allocation2 + $0x1f8] sm:$0xff] }
  0x2b   :  { %231 = vst [vmem:[#allocation7 + $0xd8] sm:$0xff] %v167_v36  ;;  %v96_v36 = vld [vmem:[#allocation2 + $0x1a0] sm:$0xff]  ;;  %v190_v38 = vadd.f32 %v455_v53, %v94_v31  ;;  %v195_v53 = vadd.f32 %v470_v7, %v99_v42 }
  0x2c   :  { %232 = vst [vmem:[#allocation7 + $0xe0] sm:$0xff] %v168_v40  ;;  %v98_v40 = vld [vmem:[#allocation2 + $0x1b0] sm:$0xff]  ;;  %v192_v44 = vadd.f32 %v461_v59, %v96_v36  ;;  %v197_v59 = vadd.f32 %v476_v16, %v101_v46  ;;  %v203_v16 = vadd.f32 %v494_v43, %v107_v55 }
  0x2d   :  { %233 = vst [vmem:[#allocation7 + $0xe8] sm:$0xff] %v169_v45  ;;  %v100_v45 = vld [vmem:[#allocation2 + $0x1c0] sm:$0xff]  ;;  %v194_v50 = vadd.f32 %v467_v2, %v98_v40  ;;  %v199_v2 = vadd.f32 %v482_v25, %v103_v49 }
  0x2e   :  { %234 = vst [vmem:[#allocation7 + $0xf0] sm:$0xff] %v170_v48  ;;  %v102_v48 = vld [vmem:[#allocation2 + $0x1d0] sm:$0xff]  ;;  %v196_v56 = vadd.f32 %v473_v11, %v100_v45  ;;  %v201_v11 = vadd.f32 %v488_v34, %v105_v52 }
  0x2f   :  { %235 = vst [vmem:[#allocation7 + $0xf8] sm:$0xff] %v171_v51  ;;  %v104_v51 = vld [vmem:[#allocation2 + $0x1e0] sm:$0xff]  ;;  %v198_v62 = vadd.f32 %v479_v20, %v102_v48 }
  0x30   :  { %236 = vst [vmem:[#allocation7 + $0x100] sm:$0xff] %v172_v54  ;;  %v106_v54 = vld [vmem:[#allocation2 + $0x1f0] sm:$0xff]  ;;  %v200_v7 = vadd.f32 %v485_v29, %v104_v51 }
  0x31   :  { %237 = vst [vmem:[#allocation7 + $0x108] sm:$0xff] %v173_v57  ;;  %v202_v57 = vadd.f32 %v491_v39, %v106_v54 }
  0x32   :  { %238 = vst [vmem:[#allocation7 + $0x110] sm:$0xff] %v174_v60 }
  0x33   :  { %239 = vst [vmem:[#allocation7 + $0x118] sm:$0xff] %v175_v63 }
  0x34   :  { %240 = vst [vmem:[#allocation7 + $0x120] sm:$0xff] %v176_v3 }
  0x35   :  { %241 = vst [vmem:[#allocation7 + $0x128] sm:$0xff] %v177_v1 }
  0x36   :  { %242 = vst [vmem:[#allocation7 + $0x130] sm:$0xff] %v178_v4 }
  0x37   :  { %243 = vst [vmem:[#allocation7 + $0x138] sm:$0xff] %v179_v6 }
  0x38   :  { %244 = vst [vmem:[#allocation7 + $0x140] sm:$0xff] %v180_v10 }
  0x39   :  { %245 = vst [vmem:[#allocation7 + $0x148] sm:$0xff] %v181_v13 }
  0x3a   :  { %246 = vst [vmem:[#allocation7 + $0x150] sm:$0xff] %v182_v15 }
  0x3b   :  { %247 = vst [vmem:[#allocation7 + $0x158] sm:$0xff] %v183_v19 }
  0x3c   :  { %248 = vst [vmem:[#allocation7 + $0x160] sm:$0xff] %v184_v22 }
  0x3d   :  { %249 = vst [vmem:[#allocation7 + $0x168] sm:$0xff] %v185_v24 }
  0x3e   :  { %250 = vst [vmem:[#allocation7 + $0x170] sm:$0xff] %v186_v27 }
  0x3f   :  { %251 = vst [vmem:[#allocation7 + $0x178] sm:$0xff] %v187_v30 }
  0x40   :  { %252 = vst [vmem:[#allocation7 + $0x180] sm:$0xff] %v188_v32 }
  0x41   :  { %253 = vst [vmem:[#allocation7 + $0x188] sm:$0xff] %v189_v35 }
  0x42   :  { %254 = vst [vmem:[#allocation7 + $0x190] sm:$0xff] %v190_v38 }
  0x43   :  { %255 = vst [vmem:[#allocation7 + $0x198] sm:$0xff] %v191_v41 }
  0x44   :  { %256 = vst [vmem:[#allocation7 + $0x1a0] sm:$0xff] %v192_v44 }
  0x45   :  { %257 = vst [vmem:[#allocation7 + $0x1a8] sm:$0xff] %v193_v47 }
  0x46   :  { %258 = vst [vmem:[#allocation7 + $0x1b0] sm:$0xff] %v194_v50 }
  0x47   :  { %259 = vst [vmem:[#allocation7 + $0x1b8] sm:$0xff] %v195_v53 }
  0x48   :  { %260 = vst [vmem:[#allocation7 + $0x1c0] sm:$0xff] %v196_v56 }
  0x49   :  { %261 = vst [vmem:[#allocation7 + $0x1c8] sm:$0xff] %v197_v59 }
  0x4a   :  { %262 = vst [vmem:[#allocation7 + $0x1d0] sm:$0xff] %v198_v62 }
  0x4b   :  { %263 = vst [vmem:[#allocation7 + $0x1d8] sm:$0xff] %v199_v2 }
  0x4c   :  { %264 = vst [vmem:[#allocation7 + $0x1e0] sm:$0xff] %v200_v7 }
  0x4d   :  { %265 = vst [vmem:[#allocation7 + $0x1e8] sm:$0xff] %v201_v11 }
  0x4e   :  { %266 = vst [vmem:[#allocation7 + $0x1f0] sm:$0xff] %v202_v57 }
  0x4f   :  { %267 = vst [vmem:[#allocation7 + $0x1f8] sm:$0xff] %v203_v16 }
  0x50   :  { %280 = dma.vmem_to_hbm [thread:$0]  %s273_s1, 8192, %s275_s23, [#allocation4], %s372_s17, %s372_s17, %s373_s18  }
  0x51   :  { %369 = dma.done.wait [#allocation4], 8192  }
  0x52   :  { %370 = vsyncadd [#allocation4], 4294959104 }
  0x53   :  { %285 = vsyncpa [#allocation3], 1 }
  0x54   :  { %286 = vsyncpa [#allocation6], 1 }
  0x55   :  { %287 = vsyncpa [#allocation4], 1 }

</bundles_post_ra>
